<compile_context>
chip_gen: v5e
topology: v5e:2x2
jax: 0.10.0
libtpu: 0.0.40
codegen_flags: <defaults>
</compile_context>

<pallas_src>
import functools

import jax
import jax.numpy as jnp
from jax.experimental import pallas as pl
from jax.experimental.pallas import tpu as pltpu

MAX_LOG_STD = 0.5
MIN_LOG_STD = -20.0

LANE = 128
SUBLANE = 8


def _round_up(n, m):
    return ((n + m - 1) // m) * m


def _encoder_kernel(x_ref, w1_ref, b1_ref, w2_ref, b2_ref, w3_ref, b3_ref,
                    wh_ref, bh_ref, out_ref, *, lpad):
    """3x (Linear+ReLU) then one fused [mu | log_std] head, single wide store."""
    x = x_ref[...].astype(jnp.bfloat16)
    h = jnp.maximum(
        jnp.dot(x, w1_ref[...], preferred_element_type=jnp.float32)
        + b1_ref[...], 0.0)
    h = jnp.maximum(
        jnp.dot(h.astype(jnp.bfloat16), w2_ref[...],
                preferred_element_type=jnp.float32) + b2_ref[...], 0.0)
    h = jnp.maximum(
        jnp.dot(h.astype(jnp.bfloat16), w3_ref[...],
                preferred_element_type=jnp.float32) + b3_ref[...], 0.0)

    # Fused head: one matmul produces [ mu | log_std ], 2*lpad lanes wide.
    head = jnp.dot(h.astype(jnp.bfloat16), wh_ref[...],
                   preferred_element_type=jnp.float32) + bh_ref[...]

    # Clamp only the log_std half; keep a single lane-dense store.
    lane_idx = jax.lax.broadcasted_iota(jnp.int32, head.shape, dimension=1)
    clipped = jnp.clip(head, MIN_LOG_STD, MAX_LOG_STD)
    out_ref[...] = jnp.where(lane_idx >= lpad, clipped, head)


def encoder_forward(x, params, latent_dim, *, batch_tile=256):
    """Runs the Encoder forward pass; returns (mu, log_std) like the PyTorch module."""
    B, D = x.shape
    Dp, _ = params["w1"].shape
    two_lpad = params["wh"].shape[1]
    lpad = two_lpad // 2

    Bp = _round_up(B, SUBLANE)
    x_pad = jnp.zeros((Bp, Dp), jnp.float32).at[:B, :D].set(x.astype(jnp.float32))

    weights = (params["w1"], params["b1"], params["w2"], params["b2"],
               params["w3"], params["b3"], params["wh"], params["bh"])
    kernel = functools.partial(_encoder_kernel, lpad=lpad)

    if Bp <= batch_tile:
        # Tiny batch: single invocation, no grid -> no per-step overhead and no
        # useless double-buffering of the 9 operands; everything sits in VMEM.
        out = pl.pallas_call(
            kernel,
            out_shape=jax.ShapeDtypeStruct((Bp, two_lpad), jnp.float32),
            in_specs=[pl.BlockSpec(memory_space=pltpu.MemorySpace.VMEM)]
                     * (1 + len(weights)),
            out_specs=pl.BlockSpec(memory_space=pltpu.MemorySpace.VMEM),
        )(x_pad, *weights)
    else:
        # Large batch: tile B, keep weights grid-invariant (loaded once, resident
        # in VMEM) and shard the batch axis across TensorCores.
        # TODO(synk): for very large hidden sizes on v7x (64 MiB VMEM), add
        # pipeline_mode=pl.Buffered(1) on the grid-invariant weight specs.
        Bt = _round_up(Bp, batch_tile)
        if Bt != Bp:
            x_pad = jnp.pad(x_pad, ((0, Bt - Bp), (0, 0)))
        nb = Bt // batch_tile

        def act_map(i):
            return (i, 0)

        def fixed_map(i):
            return (0, 0)

        in_specs = [pl.BlockSpec((batch_tile, Dp), act_map)]
        in_specs += [pl.BlockSpec(w.shape, fixed_map) for w in weights]
        out = pl.pallas_call(
            kernel,
            out_shape=jax.ShapeDtypeStruct((Bt, two_lpad), jnp.float32),
            grid=(nb,),
            in_specs=in_specs,
            out_specs=pl.BlockSpec((batch_tile, two_lpad), act_map),
            compiler_params=pltpu.CompilerParams(
                dimension_semantics=("parallel",)),
        )(x_pad, *weights)

    mu = out[:B, :latent_dim]
    log_std = out[:B, lpad:lpad + latent_dim]
    return mu, log_std


def init_params(key, input_dim, latent_dim, hidden_size=128):
    """Xavier-uniform weights / zero biases (weights_init_ analogue), packed into
    lane-padded bf16 kernel weights and a fused [mu | log_std] head.

    Returns (params, raw): padded/fused kernel operands, plus the unpadded f32
    weights for the pure-JAX reference.
    """
    Dp = _round_up(input_dim, LANE)
    Hp = _round_up(hidden_size, LANE)
    Lp = _round_up(latent_dim, LANE)

    def xavier(k, fan_in, fan_out):
        limit = jnp.sqrt(6.0 / (fan_in + fan_out))
        return jax.random.uniform(k, (fan_in, fan_out), jnp.float32, -limit, limit)

    keys = jax.random.split(key, 5)
    raw = {
        "w1": xavier(keys[0], input_dim, hidden_size),
        "w2": xavier(keys[1], hidden_size, hidden_size),
        "w3": xavier(keys[2], hidden_size, hidden_size),
        "wmu": xavier(keys[3], hidden_size, latent_dim),
        "wls": xavier(keys[4], hidden_size, latent_dim),
        "b1": jnp.zeros((hidden_size,), jnp.float32),
        "b2": jnp.zeros((hidden_size,), jnp.float32),
        "b3": jnp.zeros((hidden_size,), jnp.float32),
        "bmu": jnp.zeros((latent_dim,), jnp.float32),
        "bls": jnp.zeros((latent_dim,), jnp.float32),
    }

    def pad_w(w, rows, cols):
        out = jnp.zeros((rows, cols), jnp.float32)
        return out.at[:w.shape[0], :w.shape[1]].set(w).astype(jnp.bfloat16)

    def pad_b(b, cols):
        return jnp.zeros((1, cols), jnp.float32).at[0, :b.shape[0]].set(b)

    # Fused head weight [ mu | log_std ], each half padded to a full 128-lane block.
    wh = jnp.zeros((Hp, 2 * Lp), jnp.float32)
    wh = wh.at[:hidden_size, :latent_dim].set(raw["wmu"])
    wh = wh.at[:hidden_size, Lp:Lp + latent_dim].set(raw["wls"])
    bh = jnp.zeros((1, 2 * Lp), jnp.float32)
    bh = bh.at[0, :latent_dim].set(raw["bmu"])
    bh = bh.at[0, Lp:Lp + latent_dim].set(raw["bls"])

    params = {
        "w1": pad_w(raw["w1"], Dp, Hp), "b1": pad_b(raw["b1"], Hp),
        "w2": pad_w(raw["w2"], Hp, Hp), "b2": pad_b(raw["b2"], Hp),
        "w3": pad_w(raw["w3"], Hp, Hp), "b3": pad_b(raw["b3"], Hp),
        "wh": wh.astype(jnp.bfloat16), "bh": bh,
    }
    return params, raw


def encoder_forward_ref_f32(x, raw):
    """Pure f32 reference with the original (unpadded) weights — torch semantics."""
    h = jax.nn.relu(x @ raw["w1"] + raw["b1"])
    h = jax.nn.relu(h @ raw["w2"] + raw["b2"])
    h = jax.nn.relu(h @ raw["w3"] + raw["b3"])
    mu = h @ raw["wmu"] + raw["bmu"]
    log_std = jnp.clip(h @ raw["wls"] + raw["bls"], MIN_LOG_STD, MAX_LOG_STD)
    return mu, log_std


def encoder_forward_ref_padded(x, params, latent_dim):
    """Pure-JAX reference doing the same padded-bf16 math as the kernel."""
    Dp = params["w1"].shape[0]
    lpad = params["wh"].shape[1] // 2
    B, D = x.shape
    xp = jnp.zeros((B, Dp), jnp.float32).at[:, :D].set(x)

    def dense(a, w, b):
        return jnp.dot(a.astype(jnp.bfloat16), w,
                       preferred_element_type=jnp.float32) + b

    h = jax.nn.relu(dense(xp, params["w1"], params["b1"]))
    h = jax.nn.relu(dense(h, params["w2"], params["b2"]))
    h = jax.nn.relu(dense(h, params["w3"], params["b3"]))
    head = dense(h, params["wh"], params["bh"])
    mu = head[:, :latent_dim]
    log_std = jnp.clip(head[:, lpad:lpad + latent_dim], MIN_LOG_STD, MAX_LOG_STD)
    return mu, log_std


if __name__ == "__main__":
    INPUT_DIM, LATENT_DIM, HIDDEN = 16, 32, 128   # Encoder default hidden_size=128

    root = jax.random.PRNGKey(0)
    k_params, k_x1, k_x2 = jax.random.split(root, 3)
    params, raw = init_params(k_params, INPUT_DIM, LATENT_DIM, HIDDEN)

    # --- small batch: single-invocation (no-grid) path ---
    x_small = jax.random.normal(k_x1, (8, INPUT_DIM), jnp.float32)
    mu, log_std = encoder_forward(x_small, params, LATENT_DIM)
    jax.block_until_ready((mu, log_std))

    mu_pr, ls_pr = encoder_forward_ref_padded(x_small, params, LATENT_DIM)
    assert jnp.allclose(mu, mu_pr, atol=1e-3, rtol=1e-3), "mu mismatch (padded ref)"
    assert jnp.allclose(log_std, ls_pr, atol=1e-3, rtol=1e-3), "log_std mismatch (padded ref)"

    mu_fr, ls_fr = encoder_forward_ref_f32(x_small, raw)
    assert jnp.allclose(mu, mu_fr, atol=5e-2, rtol=5e-2), "mu mismatch (f32 ref)"
    assert jnp.allclose(log_std, ls_fr, atol=5e-2, rtol=5e-2), "log_std mismatch (f32 ref)"

    # --- slightly larger batch: exercise the batch-tiled "parallel" grid path ---
    x_big = jax.random.normal(k_x2, (16, INPUT_DIM), jnp.float32)
    mu_b, ls_b = encoder_forward(x_big, params, LATENT_DIM, batch_tile=8)
    jax.block_until_ready((mu_b, ls_b))
    mu_bref, ls_bref = encoder_forward_ref_padded(x_big, params, LATENT_DIM)
    assert jnp.allclose(mu_b, mu_bref, atol=1e-3, rtol=1e-3), "mu mismatch (tiled)"
    assert jnp.allclose(ls_b, ls_bref, atol=1e-3, rtol=1e-3), "log_std mismatch (tiled)"

    print("KERNEL_OK")
</pallas_src>

<mosaic_0001>
module attributes {stable_mosaic.version = 11 : i64} {
  func.func @_encoder_kernel(%arg0: memref<8x128xf32, #tpu.memory_space<vmem>>, %arg1: memref<128x128xbf16, #tpu.memory_space<vmem>>, %arg2: memref<1x128xf32, #tpu.memory_space<vmem>>, %arg3: memref<128x128xbf16, #tpu.memory_space<vmem>>, %arg4: memref<1x128xf32, #tpu.memory_space<vmem>>, %arg5: memref<128x128xbf16, #tpu.memory_space<vmem>>, %arg6: memref<1x128xf32, #tpu.memory_space<vmem>>, %arg7: memref<128x256xbf16, #tpu.memory_space<vmem>>, %arg8: memref<1x256xf32, #tpu.memory_space<vmem>>, %arg9: memref<8x256xf32, #tpu.memory_space<vmem>>) attributes {dimension_semantics = [], scalar_prefetch = 0 : i64, scratch_operands = 0 : i64, tpu.core_type = #tpu.core_type<tc>} {
    %c0 = arith.constant 0 : index
    %c0_0 = arith.constant 0 : index
    %0 = vector.load %arg0[%c0, %c0_0] : memref<8x128xf32, #tpu.memory_space<vmem>>, vector<8x128xf32>
    %1 = arith.truncf %0 : vector<8x128xf32> to vector<8x128xbf16>
    %c0_1 = arith.constant 0 : index
    %c0_2 = arith.constant 0 : index
    %2 = vector.load %arg1[%c0_1, %c0_2] : memref<128x128xbf16, #tpu.memory_space<vmem>>, vector<128x128xbf16>
    %cst = arith.constant dense<0.000000e+00> : vector<8x128xf32>
    %3 = tpu.matmul %1, %2, %cst {dimension_numbers = #tpu.dot_dimension_numbers<[1], [0], [0], [1], [0, 0, 1, 1], [], []>} : vector<8x128xbf16>, vector<128x128xbf16>, vector<8x128xf32> -> vector<8x128xf32>
    %c0_3 = arith.constant 0 : index
    %c0_4 = arith.constant 0 : index
    %4 = vector.load %arg2[%c0_3, %c0_4] : memref<1x128xf32, #tpu.memory_space<vmem>>, vector<1x128xf32>
    %5 = vector.broadcast %4 : vector<1x128xf32> to vector<8x128xf32>
    %6 = arith.addf %3, %5 : vector<8x128xf32>
    %cst_5 = arith.constant 0.000000e+00 : f32
    %7 = vector.broadcast %cst_5 : f32 to vector<8x128xf32>
    %8 = arith.maximumf %6, %7 : vector<8x128xf32>
    %9 = arith.truncf %8 : vector<8x128xf32> to vector<8x128xbf16>
    %c0_6 = arith.constant 0 : index
    %c0_7 = arith.constant 0 : index
    %10 = vector.load %arg3[%c0_6, %c0_7] : memref<128x128xbf16, #tpu.memory_space<vmem>>, vector<128x128xbf16>
    %cst_8 = arith.constant dense<0.000000e+00> : vector<8x128xf32>
    %11 = tpu.matmul %9, %10, %cst_8 {dimension_numbers = #tpu.dot_dimension_numbers<[1], [0], [0], [1], [0, 0, 1, 1], [], []>} : vector<8x128xbf16>, vector<128x128xbf16>, vector<8x128xf32> -> vector<8x128xf32>
    %c0_9 = arith.constant 0 : index
    %c0_10 = arith.constant 0 : index
    %12 = vector.load %arg4[%c0_9, %c0_10] : memref<1x128xf32, #tpu.memory_space<vmem>>, vector<1x128xf32>
    %13 = vector.broadcast %12 : vector<1x128xf32> to vector<8x128xf32>
    %14 = arith.addf %11, %13 : vector<8x128xf32>
    %cst_11 = arith.constant 0.000000e+00 : f32
    %15 = vector.broadcast %cst_11 : f32 to vector<8x128xf32>
    %16 = arith.maximumf %14, %15 : vector<8x128xf32>
    %17 = arith.truncf %16 : vector<8x128xf32> to vector<8x128xbf16>
    %c0_12 = arith.constant 0 : index
    %c0_13 = arith.constant 0 : index
    %18 = vector.load %arg5[%c0_12, %c0_13] : memref<128x128xbf16, #tpu.memory_space<vmem>>, vector<128x128xbf16>
    %cst_14 = arith.constant dense<0.000000e+00> : vector<8x128xf32>
    %19 = tpu.matmul %17, %18, %cst_14 {dimension_numbers = #tpu.dot_dimension_numbers<[1], [0], [0], [1], [0, 0, 1, 1], [], []>} : vector<8x128xbf16>, vector<128x128xbf16>, vector<8x128xf32> -> vector<8x128xf32>
    %c0_15 = arith.constant 0 : index
    %c0_16 = arith.constant 0 : index
    %20 = vector.load %arg6[%c0_15, %c0_16] : memref<1x128xf32, #tpu.memory_space<vmem>>, vector<1x128xf32>
    %21 = vector.broadcast %20 : vector<1x128xf32> to vector<8x128xf32>
    %22 = arith.addf %19, %21 : vector<8x128xf32>
    %cst_17 = arith.constant 0.000000e+00 : f32
    %23 = vector.broadcast %cst_17 : f32 to vector<8x128xf32>
    %24 = arith.maximumf %22, %23 : vector<8x128xf32>
    %25 = arith.truncf %24 : vector<8x128xf32> to vector<8x128xbf16>
    %c0_18 = arith.constant 0 : index
    %c0_19 = arith.constant 0 : index
    %26 = vector.load %arg7[%c0_18, %c0_19] : memref<128x256xbf16, #tpu.memory_space<vmem>>, vector<128x256xbf16>
    %cst_20 = arith.constant dense<0.000000e+00> : vector<8x256xf32>
    %27 = tpu.matmul %25, %26, %cst_20 {dimension_numbers = #tpu.dot_dimension_numbers<[1], [0], [0], [1], [0, 0, 1, 1], [], []>} : vector<8x128xbf16>, vector<128x256xbf16>, vector<8x256xf32> -> vector<8x256xf32>
    %c0_21 = arith.constant 0 : index
    %c0_22 = arith.constant 0 : index
    %28 = vector.load %arg8[%c0_21, %c0_22] : memref<1x256xf32, #tpu.memory_space<vmem>>, vector<1x256xf32>
    %29 = vector.broadcast %28 : vector<1x256xf32> to vector<8x256xf32>
    %30 = arith.addf %27, %29 : vector<8x256xf32>
    %31 = tpu.iota {dimensions = array<i32: 1>} : vector<8x256xi32>
    %cst_23 = arith.constant -2.000000e+01 : f32
    %cst_24 = arith.constant 5.000000e-01 : f32
    %32 = vector.broadcast %cst_23 : f32 to vector<8x256xf32>
    %33 = arith.maximumf %32, %30 : vector<8x256xf32>
    %34 = vector.broadcast %cst_24 : f32 to vector<8x256xf32>
    %35 = arith.minimumf %34, %33 : vector<8x256xf32>
    %c128_i32 = arith.constant 128 : i32
    %36 = vector.broadcast %c128_i32 : i32 to vector<8x256xi32>
    %37 = arith.cmpi sge, %31, %36 : vector<8x256xi32>
    %38 = arith.select %37, %35, %30 : vector<8x256xi1>, vector<8x256xf32>
    %c0_25 = arith.constant 0 : index
    %c0_26 = arith.constant 0 : index
    %39 = vector.load %arg9[%c0_25, %c0_26] : memref<8x256xf32, #tpu.memory_space<vmem>>, vector<8x256xf32>
    tpu.vector_store %arg9[%c0_25, %c0_26], %38 {strides = array<i32>} : memref<8x256xf32, #tpu.memory_space<vmem>>, vector<8x256xf32>,
    return
  }
}

</mosaic_0001>

<bundles_post_ra>
// kernel: tpu_custom_call.1
= control target key start
LH: loop header
LB: loop body
LE: loop exit
PB: predicated region body
PF: predicated region fallthrough
CT: control target
= control target key end

     0   :  { %14 = vsyncpa [#allocation3], 0  ;;  %s1027_s0 = inlined_call_operand.hbm [shape: f32[8,128], index: 0, kind: input, shape index: {}]   ;;  %s1028_s1 = inlined_call_operand.hbm [shape: bf16[128,128], index: 1, kind: input, shape index: {}]   ;;  %s1029_s2 = inlined_call_operand.vmem [shape: f32[1,128], index: 2, kind: input, shape index: {}]   ;;  %s1030_s3 = inlined_call_operand.hbm [shape: bf16[128,128], index: 3, kind: input, shape index: {}]   ;;  %s1031_s4 = inlined_call_operand.hbm [shape: f32[1,128], index: 4, kind: input, shape index: {}]   ;;  %s1032_s5 = inlined_call_operand.hbm [shape: bf16[128,128], index: 5, kind: input, shape index: {}]   ;;  %s1033_s6 = inlined_call_operand.vmem [shape: f32[1,128], index: 6, kind: input, shape index: {}]   ;;  %s1034_s7 = inlined_call_operand.hbm [shape: bf16[128,256], index: 7, kind: input, shape index: {}]   ;;  %s1035_s8 = inlined_call_operand.vmem [shape: f32[1,256], index: 8, kind: input, shape index: {}]   ;;  %s1036_s9 = inlined_call_operand.hbm [shape: f32[8,256], index: 9, kind: output, shape index: {}]  }
   0x1   :  { %15 = vsyncpa [#allocation6], 0 }
   0x2   :  { %16 = vsyncpa [#allocation9], 0 }
   0x3   :  { %17 = vsyncpa [#allocation12], 0  ;;  %s34_s11 = sshll.u32 %s1028_s1, 4  ;;  %s35_s11 = int_to_ptr.hbm [resolvable:$true] %s34_s11 }
   0x4   :  { %18 = vsyncpa [#allocation4], 0  ;;  %s927_s12 = smov [#allocation5]   ;;  %s63_s16 = sshll.u32 %s1031_s4, 4  ;;  %s64_s16 = int_to_ptr.hbm [resolvable:$true] %s63_s16 }
   0x5   :  { %s36_s13 = sshll.u32 %s927_s12, 4  ;;  %s928_s17 = smov 64   ;;  %s37_s13 = int_to_ptr.vmem [resolvable:$true] %s36_s13 }
   0x6   :  { %s929_s18 = smov 4   ;;  %s930_s19 = smov [#allocation8]  }
   0x7   :  { %42 = dma.hbm_to_vmem [thread:$0]  %s35_s11, 1024, %s37_s13, [#allocation6], %s928_s17, %s928_s17, %s929_s18  }
   0x8   :  { %s65_s20 = sshll.u32 %s930_s19, 4  ;;  %s24_s22 = sshll.u32 %s1027_s0, 4  ;;  %s66_s20 = int_to_ptr.vmem [resolvable:$true] %s65_s20  ;;  %s25_s22 = int_to_ptr.hbm [resolvable:$true] %s24_s22 }
   0x9   :  { %68 = dma.hbm_to_vmem [thread:$0]  %s64_s16, 16, %s66_s20, [#allocation9]  }
   0xa   :  { %s49_s4 = sshll.u32 %s1030_s3, 4  ;;  %s931_s25 = smov [#allocation2]   ;;  %s50_s4 = int_to_ptr.hbm [resolvable:$true] %s49_s4 }
   0xb   :  { %s26_s26 = sshll.u32 %s931_s25, 4  ;;  %s932_s27 = smov [#allocation7]   ;;  %s27_s26 = int_to_ptr.vmem [resolvable:$true] %s26_s26 }
   0xc   :  { %29 = dma.hbm_to_vmem [thread:$0]  %s25_s22, 128, %s27_s26, [#allocation3]  }
   0xd   :  { %s51_s28 = sshll.u32 %s932_s27, 4  ;;  %s73_s10 = sshll.u32 %s1032_s5, 4  ;;  %s52_s28 = int_to_ptr.vmem [resolvable:$true] %s51_s28  ;;  %s74_s10 = int_to_ptr.hbm [resolvable:$true] %s73_s10 }
   0xe   :  { %57 = dma.hbm_to_vmem [thread:$0]  %s50_s4, 1024, %s52_s28, [#allocation6], %s928_s17, %s928_s17, %s929_s18  }
   0xf   :  { %s88_s3 = sshll.u32 %s1034_s7, 4  ;;  %s933_s12 = smov [#allocation10]   ;;  %s89_s3 = int_to_ptr.hbm [resolvable:$true] %s88_s3 }
  0x10   :  { %s75_s13 = sshll.u32 %s933_s12, 4  ;;  %s934_s14 = smov [#allocation11]   ;;  %s76_s13 = int_to_ptr.vmem [resolvable:$true] %s75_s13 }
  0x11   :  { %81 = dma.hbm_to_vmem [thread:$0]  %s74_s10, 1024, %s76_s13, [#allocation9], %s928_s17, %s928_s17, %s929_s18  }
  0x12   :  { %s90_s5 = sshll.u32 %s934_s14, 4  ;;  %s935_s15 = smov 128   ;;  %s91_s5 = int_to_ptr.vmem [resolvable:$true] %s90_s5 }
  0x13   :  { %s936_s16 = smov 8  }
  0x14   :  { %96 = dma.hbm_to_vmem [thread:$0]  %s89_s3, 2048, %s91_s5, [#allocation12], %s935_s15, %s935_s15, %s936_s16  }
  0x15   :  { %917 = dma.done.wait [#allocation3], 128  }
  0x16   :  { %918 = vsyncadd [#allocation3], 4294967168 }
  0x17   :  { %919 = dma.done.wait [#allocation6], 2048  }
  0x18   :  { %920 = vsyncadd [#allocation6], 4294965248 }
  0x19   :  { %921 = dma.done.wait [#allocation9], 1040  }
  0x1a   :  { %922 = vsyncadd [#allocation9], 4294966256 }
  0x1b   :  { %923 = dma.done.wait [#allocation12], 2048  }
  0x1c   :  { %924 = vsyncadd [#allocation12], 4294965248  ;;  %v702_v0 = vld [vmem:[#allocation5 + $0x38] sm:$0xff]  ;;  %v701_v1 = vld [vmem:[#allocation5 + $0x30] sm:$0xff]  ;;  %s937_s21 = smov [#allocation13]   ;;  %s522_s23 = sshll.u32 %s1036_s9, 4  ;;  %s523_s23 = int_to_ptr.hbm [resolvable:$true] %s522_s23 }
  0x1d   :  { %193 = vmatpush.bf16.msra.mxu0 %v702_v0  ;;  %v710_v2 = vld [vmem:[#allocation7 + $0x38] sm:$0xff]  ;;  %v709_v3 = vld [vmem:[#allocation7 + $0x30] sm:$0xff]  ;;  %v700_v4 = vld [vmem:[#allocation5 + $0x28] sm:$0xff]  ;;  %s520_s1 = sshll.u32 %s937_s21, 4  ;;  %s521_s1 = int_to_ptr.vmem [resolvable:$true] %s520_s1 }
  0x1e   :  { %276 = vmatpush.bf16.msra.mxu1 %v710_v2  ;;  %v708_v5 = vld [vmem:[#allocation7 + $0x28] sm:$0xff]  ;;  %v699_v6 = vld [vmem:[#allocation5 + $0x20] sm:$0xff]  ;;  %v698_v8 = vld [vmem:[#allocation5 + $0x18] sm:$0xff] }
  0x1f   :  { %v707_v7 = vld [vmem:[#allocation7 + $0x20] sm:$0xff]  ;;  %v706_v9 = vld [vmem:[#allocation7 + $0x18] sm:$0xff]  ;;  %v697_v10 = vld [vmem:[#allocation5 + $0x10] sm:$0xff] }
  0x20   :  { %v705_v11 = vld [vmem:[#allocation7 + $0x10] sm:$0xff]  ;;  %v696_v12 = vld [vmem:[#allocation5 + $0x8] sm:$0xff]  ;;  %v695_v13 = vld [vmem:[#allocation5] sm:$0xff] }
  0x21   :  { %194 = vmatpush.bf16.msra.mxu0 %v701_v1  ;;  %v123_v14 = vld [vmem:[#allocation2] sm:$0xff]  ;;  %v704_v16 = vld [vmem:[#allocation7 + $0x8] sm:$0xff]  ;;  %v703_v17 = vld [vmem:[#allocation7] sm:$0xff] }
  0x22   :  { %277 = vmatpush.bf16.msra.mxu1 %v709_v3  ;;  %v124_v15 = vpack.c.bf16 %v123_v14, %v123_v14  ;;  %v718_v18 = vld [vmem:[#allocation10 + $0x38] sm:$0xff]  ;;  %v717_v19 = vld [vmem:[#allocation10 + $0x30] sm:$0xff]  ;;  %v716_v20 = vld [vmem:[#allocation10 + $0x28] sm:$0xff] }
  0x23   :  { %359 = vmatpush.bf16.msra.mxu2 %v718_v18  ;;  %v715_v21 = vld [vmem:[#allocation10 + $0x20] sm:$0xff]  ;;  %v714_v22 = vld [vmem:[#allocation10 + $0x18] sm:$0xff]  ;;  %v713_v23 = vld [vmem:[#allocation10 + $0x10] sm:$0xff] }
  0x24   :  { %v746_v24 = vld [vmem:[%s1029_s2] ss:$0 sm:$0xff]  ;;  %v712_v30 = vld [vmem:[#allocation10 + $0x8] sm:$0xff]  ;;  %v711_v31 = vld [vmem:[#allocation10] sm:$0xff] }
  0x25   :  { %195 = vmatpush.bf16.msra.mxu0 %v700_v4  ;;  %v689_v32 = vld [vmem:[#allocation11 + $0x70] sm:$0xf]  ;;  %v734_v33 = vld [vmem:[#allocation11 + $0x74] sm:$0xf0]  ;;  %v733_v34 = vld [vmem:[#allocation11 + $0x74] sm:$0xf] }
  0x26   :  { %278 = vmatpush.bf16.msra.mxu1 %v708_v5  ;;  %v690_v35 = vor.u32 %v734_v33, %v689_v32  ;;  %v691_v36 = vld [vmem:[#allocation11 + $0x78] sm:$0xf0]  ;;  %v681_v37 = vld [vmem:[#allocation11 + $0x60] sm:$0xf]  ;;  %v732_v38 = vld [vmem:[#allocation11 + $0x64] sm:$0xf0] }
  0x27   :  { %360 = vmatpush.bf16.msra.mxu2 %v717_v19  ;;  %v694_v39 = vor.u32 %v733_v34, %v691_v36  ;;  %v731_v40 = vld [vmem:[#allocation11 + $0x64] sm:$0xf]  ;;  %v683_v41 = vld [vmem:[#allocation11 + $0x68] sm:$0xf0]  ;;  %v682_v42 = vor.u32 %v732_v38, %v681_v37  ;;  %v673_v44 = vld [vmem:[#allocation11 + $0x50] sm:$0xf] }
  0x28   :  { %476 = vmatpush.bf16.msra.mxu3 %v690_v35  ;;  %v686_v43 = vor.u32 %v731_v40, %v683_v41  ;;  %v730_v45 = vld [vmem:[#allocation11 + $0x54] sm:$0xf0]  ;;  %v729_v46 = vld [vmem:[#allocation11 + $0x54] sm:$0xf]  ;;  %v675_v47 = vld [vmem:[#allocation11 + $0x58] sm:$0xf0] }
  0x29   :  { %196 = vmatpush.bf16.msra.mxu0 %v699_v6  ;;  %v674_v48 = vor.u32 %v730_v45, %v673_v44  ;;  %v678_v49 = vor.u32 %v729_v46, %v675_v47  ;;  %v665_v50 = vld [vmem:[#allocation11 + $0x40] sm:$0xf]  ;;  %v728_v51 = vld [vmem:[#allocation11 + $0x44] sm:$0xf0]  ;;  %v727_v52 = vld [vmem:[#allocation11 + $0x44] sm:$0xf] }
  0x2a   :  { %279 = vmatpush.bf16.msra.mxu1 %v707_v7  ;;  %v667_v53 = vld [vmem:[#allocation11 + $0x48] sm:$0xf0]  ;;  %v666_v54 = vor.u32 %v728_v51, %v665_v50  ;;  %v657_v56 = vld [vmem:[#allocation11 + $0x30] sm:$0xf]  ;;  %v726_v57 = vld [vmem:[#allocation11 + $0x34] sm:$0xf0] }
  0x2b   :  { %361 = vmatpush.bf16.msra.mxu2 %v716_v20  ;;  %v670_v55 = vor.u32 %v727_v52, %v667_v53  ;;  %v725_v58 = vld [vmem:[#allocation11 + $0x34] sm:$0xf]  ;;  %v659_v59 = vld [vmem:[#allocation11 + $0x38] sm:$0xf0]  ;;  %v658_v60 = vor.u32 %v726_v57, %v657_v56  ;;  %v649_v62 = vld [vmem:[#allocation11 + $0x20] sm:$0xf] }
  0x2c   :  { %477 = vmatpush.bf16.msra.mxu3 %v682_v42  ;;  %v662_v61 = vor.u32 %v725_v58, %v659_v59  ;;  %v724_v63 = vld [vmem:[#allocation11 + $0x24] sm:$0xf0]  ;;  %v723_v0 = vld [vmem:[#allocation11 + $0x24] sm:$0xf]  ;;  %v651_v1 = vld [vmem:[#allocation11 + $0x28] sm:$0xf0] }
  0x2d   :  { %197 = vmatpush.bf16.msra.mxu0 %v698_v8  ;;  %v650_v2 = vor.u32 %v724_v63, %v649_v62  ;;  %v654_v3 = vor.u32 %v723_v0, %v651_v1  ;;  %v747_v4 = vld [vmem:[#allocation8] ss:$0 sm:$0xff]  ;;  %v719_v18 = vld [vmem:[#allocation11 + $0x4] sm:$0xf]  ;;  %v635_v20 = vld [vmem:[#allocation11 + $0x8] sm:$0xf0] }
  0x2e   :  { %280 = vmatpush.bf16.msra.mxu1 %v706_v9  ;;  %v643_v14 = vld [vmem:[#allocation11 + $0x18] sm:$0xf0] }
  0x2f   :  { %362 = vmatpush.bf16.msra.mxu2 %v715_v21  ;;  %v638_v21 = vor.u32 %v719_v18, %v635_v20 }
  0x30   :  { %478 = vmatpush.bf16.msra.mxu3 %v674_v48 }
  0x31   :  { %198 = vmatpush.bf16.msra.mxu0 %v697_v10  ;;  %v641_v10 = vld [vmem:[#allocation11 + $0x10] sm:$0xf] }
  0x32   :  { %281 = vmatpush.bf16.msra.mxu1 %v705_v11  ;;  %v722_v11 = vld [vmem:[#allocation11 + $0x14] sm:$0xf0] }
  0x33   :  { %363 = vmatpush.bf16.msra.mxu2 %v714_v22  ;;  %v748_v22 = vld [vmem:[%s1033_s6] ss:$0 sm:$0xff] }
  0x34   :  { %479 = vmatpush.bf16.msra.mxu3 %v666_v54 }
  0x35   :  { %199 = vmatpush.bf16.msra.mxu0 %v696_v12  ;;  %v721_v12 = vld [vmem:[#allocation11 + $0x14] sm:$0xf] }
  0x36   :  { %282 = vmatpush.bf16.msra.mxu1 %v704_v16  ;;  %v633_v16 = vld [vmem:[#allocation11] sm:$0xf] }
  0x37   :  { %364 = vmatpush.bf16.msra.mxu2 %v713_v23 }
  0x38   :  { %480 = vmatpush.bf16.msra.mxu3 %v658_v60 }
  0x39   :  { %200 = vmatpush.bf16.msra.mxu0 %v695_v13  ;;  %v642_v13 = vor.u32 %v722_v11, %v641_v10 }
  0x3a   :  { %283 = vmatpush.bf16.msra.mxu1 %v703_v17  ;;  %v720_v17 = vld [vmem:[#allocation11 + $0x4] sm:$0xf0] }
  0x3b   :  { %365 = vmatpush.bf16.msra.mxu2 %v712_v30  ;;  %v634_v19 = vor.u32 %v720_v17, %v633_v16 }
  0x3c   :  { %201 = vmatmul.bf16.vlgmr.msra.gmra.mxu0 %v124_v15  ;;  %481 = vmatpush.bf16.msra.mxu3 %v650_v2  ;;  %v646_v15 = vor.u32 %v721_v12, %v643_v14 }
  0x3d   :  { %489 = vmatpush.bf16.msrb.mxu0 %v694_v39 }
  0x3f   :  { %366 = vmatpush.bf16.msra.mxu2 %v711_v31 }
  0x40   :  { %482 = vmatpush.bf16.msra.mxu3 %v642_v13 }
  0x41   :  { %490 = vmatpush.bf16.msrb.mxu0 %v686_v43 }
  0x44   :  { %483 = vmatpush.bf16.msra.mxu3 %v634_v19 }
  0x45   :  { %491 = vmatpush.bf16.msrb.mxu0 %v678_v49 }
  0x49   :  { %492 = vmatpush.bf16.msrb.mxu0 %v670_v55 }
  0x4d   :  { %493 = vmatpush.bf16.msrb.mxu0 %v662_v61 }
  0x51   :  { %494 = vmatpush.bf16.msrb.mxu0 %v654_v3 }
  0x55   :  { %495 = vmatpush.bf16.msrb.mxu0 %v646_v15 }
  0x59   :  { %496 = vmatpush.bf16.msrb.mxu0 %v638_v21 }
  0xb9   :  { %v202_v25 = vpop.f32.mrf.mxu0 }
  0xba   :  { %v203_v26 = vadd.f32 %v746_v24, %v202_v25 }
  0xbc   :  { %v206_v27 = vmax.f32 %v203_v26, 0.0 }
  0xbe   :  { %v207_v28 = vpack.c.bf16 %v206_v27, %v206_v27 }
  0xc0   :  { %284 = vmatmul.bf16.vlgmr.msra.gmra.mxu1 %v207_v28  ;;  %v390_v28 = vld [vmem:[%s1035_s8] sm:$0x3] }
  0xc1   :  { %v204_v29 = vpop.f32.mrf.mxu0  ;;  %v392_v33 = vperm.slane %v390_v28, 0 }
  0xc2   :  { %v393_v29 = vperm.slane %v390_v28, 1 }
 0x13d   :  { %v285_v5 = vpop.f32.mrf.mxu1 }
 0x13e   :  { %v286_v6 = vadd.f32 %v747_v4, %v285_v5 }
 0x140   :  { %v289_v7 = vmax.f32 %v286_v6, 0.0 }
 0x142   :  { %v290_v8 = vpack.c.bf16 %v289_v7, %v289_v7 }
 0x144   :  { %367 = vmatmul.bf16.vlgmr.msra.gmra.mxu2 %v290_v8 }
 0x145   :  { %v287_v9 = vpop.f32.mrf.mxu1 }
 0x1c7   :  { %v368_v23 = vpop.f32.mrf.mxu2 }
 0x1c8   :  { %v369_v24 = vadd.f32 %v748_v22, %v368_v23 }
 0x1ca   :  { %v372_v25 = vmax.f32 %v369_v24, 0.0 }
 0x1cc   :  { %v373_v26 = vpack.c.bf16 %v372_v25, %v372_v25 }
 0x1ce   :  { %484 = vmatmul.bf16.vlgmr.msra.gmra.mxu3 %v373_v26  ;;  %497 = vmatmul.bf16.vlgmr.msrb.gmra.mxu0 %v373_v26 }
 0x1cf   :  { %v370_v27 = vpop.f32.mrf.mxu2 }
 0x24b   :  { %v498_v30 = vpop.f32.mrf.mxu0 }
 0x24c   :  { %v499_v31 = vadd.f32 %v498_v30, %v393_v29 }
 0x24e   :  { %v506_v32 = vmax.f32 %v499_v31, -20.0 }
 0x250   :  { %v508_v34 = vmin.f32 %v506_v32, 0.5 }
 0x251   :  { %v485_v35 = vpop.f32.mrf.mxu3 }
 0x252   :  { %514 = vst [vmem:[#allocation13 + $0x8] sm:$0xff] %v508_v34  ;;  %v486_v36 = vadd.f32 %v485_v35, %v392_v33 }
 0x253   :  { %v500_v37 = vpop.f32.mrf.mxu0 }
 0x254   :  { %513 = vst [vmem:[#allocation13] sm:$0xff] %v486_v36 }
 0x255   :  { %525 = dma.vmem_to_hbm [thread:$0]  %s521_s1, 256, %s523_s23, [#allocation4]  }
 0x259   :  { %v487_v38 = vpop.f32.mrf.mxu3 }
 0x25a   :  { %925 = dma.done.wait [#allocation4], 256  }
 0x25b   :  { %926 = vsyncadd [#allocation4], 4294967040 }
 0x25c   :  { %530 = vsyncpa [#allocation3], 1 }
 0x25d   :  { %531 = vsyncpa [#allocation6], 1 }
 0x25e   :  { %532 = vsyncpa [#allocation9], 1 }
 0x25f   :  { %533 = vsyncpa [#allocation12], 1 }
 0x260   :  { %534 = vsyncpa [#allocation4], 1 }

</bundles_post_ra>
